<compile_context>
chip_gen: v6e
topology: v6e:2x2x1
jax: 0.10.0
libtpu: 0.0.40
codegen_flags: <defaults>
</compile_context>

<pallas_src>
import jax
import jax.numpy as jnp
from jax.experimental import pallas as pl
from jax.experimental.pallas import tpu as pltpu


_LANE = 128
_ROW_GRAN = 32                    # sublane multiple legal for f32/bf16/int8 tilings
_SMALL_BYTES = 1 << 20            # below this, XLA's fused tanh beats kernel launch
_TARGET_BLOCK_BYTES = 8 << 20     # ~8 MiB blocks: per-step overhead <~7% even at v7x HBM BW


def _tanh_kernel(x_ref, o_ref):
    # Elementwise tanh on one (block_rows, width) VMEM tile (EUP slot).
    o_ref[...] = jnp.tanh(x_ref[...]).astype(o_ref.dtype)


def _choose_width(n: int) -> int:
    # Widest lane-dense row width that divides n exactly (n is 128-aligned here).
    for w in (4096, 2048, 1024, 512, 256, 128):
        if n % w == 0:
            return w
    return _LANE


def _tpu_vmem_and_megacore():
    """Returns (per-core VMEM bytes, is_megacore) with conservative fallbacks."""
    vmem_cap = 64 << 20          # conservative default (fits every generation)
    megacore = False
    try:
        info = pltpu.get_tpu_info()
        cap = int(getattr(info, "vmem_capacity_bytes", 0) or 0)
        if cap > 0:
            vmem_cap = cap
            # Heuristic: v7x exposes 64 MiB VMEM per TensorCore and has 2 TCs
            # per chip; v5e/v6e expose 128 MiB and have a single TC.
            megacore = cap <= (96 << 20)
    except Exception:
        pass                      # not on TPU / API unavailable: stay conservative
    return vmem_cap, megacore


def _tanh_pallas_2d(x2d, *, megacore, vmem_cap, block_bytes_cap=None):
    rows, width = x2d.shape
    itemsize = jnp.dtype(x2d.dtype).itemsize

    vmem_budget = int(vmem_cap * 0.75)
    # in + out, double-buffered (4x), ~25% headroom -> divide budget by 5.
    max_block_bytes = min(_TARGET_BLOCK_BYTES, vmem_budget // 5)
    if block_bytes_cap is not None:
        max_block_bytes = min(max_block_bytes, block_bytes_cap)
    max_block_rows = max(
        _ROW_GRAN,
        (max_block_bytes // (width * itemsize)) // _ROW_GRAN * _ROW_GRAN,
    )

    if rows <= _ROW_GRAN:
        block_rows = rows         # single full-extent block (always legal)
    else:
        min_steps = 2 if megacore else 1
        steps = max(min_steps, pl.cdiv(rows, max_block_rows))
        if megacore and steps % 2:
            steps += 1            # even grid so both TensorCores stay busy
        block_rows = pl.cdiv(pl.cdiv(rows, steps), _ROW_GRAN) * _ROW_GRAN
        block_rows = max(_ROW_GRAN, min(block_rows, max_block_rows))
        if block_rows >= rows:    # only when steps == 1: one full-extent block
            block_rows = rows

    grid = (pl.cdiv(rows, block_rows),)
    block_bytes = block_rows * width * itemsize
    vmem_limit = min(vmem_budget, max(4 << 20, block_bytes * 5))

    return pl.pallas_call(
        _tanh_kernel,
        out_shape=jax.ShapeDtypeStruct((rows, width), x2d.dtype),
        grid_spec=pltpu.PrefetchScalarGridSpec(
            num_scalar_prefetch=0,
            grid=grid,
            in_specs=[pl.BlockSpec((block_rows, width), lambda i: (i, 0))],
            out_specs=pl.BlockSpec((block_rows, width), lambda i: (i, 0)),
        ),
        compiler_params=pltpu.CompilerParams(
            dimension_semantics=("parallel",),
            vmem_limit_bytes=vmem_limit,
        ),
        cost_estimate=pl.CostEstimate(
            flops=0,
            transcendentals=rows * width,
            bytes_accessed=2 * rows * width * itemsize,
        ),
    )(x2d)


def generator_forward(z: jax.Array, *, force_pallas: bool = False,
                      _block_bytes_cap: int | None = None) -> jax.Array:
    """Applies nn.Tanh() (the Generator's only op) via a Pallas TPU kernel."""
    orig_shape = z.shape
    dtype = z.dtype
    n = z.size
    itemsize = jnp.dtype(dtype).itemsize

    # Tiny inputs: kernel launch overhead dominates; XLA fused tanh is faster.
    if n == 0 or (not force_pallas and n * itemsize < _SMALL_BYTES):
        return jnp.tanh(z)

    vmem_cap, megacore = _tpu_vmem_and_megacore()

    flat = z.reshape(-1)
    n_bulk = (n // _LANE) * _LANE            # 128-aligned bulk handled by Pallas
    if n_bulk == 0:
        return jnp.tanh(z)

    width = _choose_width(n_bulk)
    bulk2d = flat[:n_bulk].reshape(n_bulk // width, width)   # contiguous, free
    out_bulk = _tanh_pallas_2d(
        bulk2d, megacore=megacore, vmem_cap=vmem_cap,
        block_bytes_cap=_block_bytes_cap,
    ).reshape(-1)

    if n_bulk == n:
        return out_bulk.reshape(orig_shape)

    # Ragged tail (< 128 elements): no padding copies -- compute it directly.
    tail = jnp.tanh(flat[n_bulk:])
    return jnp.concatenate([out_bulk, tail]).reshape(orig_shape)


if __name__ == "__main__":
    key = jax.random.PRNGKey(0)
    k1, k2, k3 = jax.random.split(key, 3)

    # Shipped DCGAN-style feature map (small).  The auto path uses the XLA
    # fallback; the forced path exercises the single-block Pallas kernel.
    z_small = jax.random.normal(k1, (2, 4, 16, 16), dtype=jnp.float32)
    ref_small = jnp.tanh(z_small)
    out_auto = jax.block_until_ready(generator_forward(z_small))
    out_pallas = jax.block_until_ready(generator_forward(z_small, force_pallas=True))
    assert out_auto.shape == z_small.shape and out_auto.dtype == z_small.dtype
    assert out_pallas.shape == z_small.shape and out_pallas.dtype == z_small.dtype
    assert jnp.allclose(out_auto, ref_small, atol=1e-5, rtol=1e-5)
    assert jnp.allclose(out_pallas, ref_small, atol=1e-5, rtol=1e-5)

    # Medium input (2 MiB): auto path takes Pallas; the block cap forces a
    # multi-step grid so the tiled/pipelined path is exercised.
    z_med = jax.random.normal(k2, (4, 8, 128, 128), dtype=jnp.float32)
    out_med = jax.block_until_ready(
        generator_forward(z_med, _block_bytes_cap=256 * 1024))
    assert jnp.allclose(out_med, jnp.tanh(z_med), atol=1e-5, rtol=1e-5)

    # Ragged element count (not a multiple of 128): Pallas bulk + jnp tail.
    z_rag = jax.random.normal(k3, (3, 5, 7, 11), dtype=jnp.float32)
    out_rag = jax.block_until_ready(generator_forward(z_rag, force_pallas=True))
    assert jnp.allclose(out_rag, jnp.tanh(z_rag), atol=1e-5, rtol=1e-5)

    print("KERNEL_OK")
</pallas_src>

<mosaic_0001>
module attributes {stable_mosaic.version = 11 : i64} {
  func.func @_tanh_kernel(%arg0: i32, %arg1: memref<1x2048xf32, #tpu.memory_space<vmem>>, %arg2: memref<1x2048xf32, #tpu.memory_space<vmem>>) attributes {dimension_semantics = [#tpu.dimension_semantics<parallel>], iteration_bounds = array<i64: 1>, scalar_prefetch = 0 : i64, scratch_operands = 0 : i64, tpu.core_type = #tpu.core_type<tc>, window_params = [{transform_indices = @transform_0, window_bounds = array<i64: 1, 2048>}, {transform_indices = @transform_1, window_bounds = array<i64: 1, 2048>}]} {
    %c0 = arith.constant 0 : index
    %c0_0 = arith.constant 0 : index
    %0 = vector.load %arg1[%c0, %c0_0] : memref<1x2048xf32, #tpu.memory_space<vmem>>, vector<1x2048xf32>
    %1 = math.tanh %0 : vector<1x2048xf32>
    %c0_1 = arith.constant 0 : index
    %c0_2 = arith.constant 0 : index
    %2 = vector.load %arg2[%c0_1, %c0_2] : memref<1x2048xf32, #tpu.memory_space<vmem>>, vector<1x2048xf32>
    tpu.vector_store %arg2[%c0_1, %c0_2], %1 {strides = array<i32>} : memref<1x2048xf32, #tpu.memory_space<vmem>>, vector<1x2048xf32>,
    return
  }
  func.func @transform_0(%arg0: i32) -> (i32, i32) {
    %c0_i32 = arith.constant 0 : i32
    %c0_i32_0 = arith.constant 0 : i32
    return %arg0, %c0_i32 : i32, i32
  }
  func.func @transform_1(%arg0: i32) -> (i32, i32) {
    %c0_i32 = arith.constant 0 : i32
    %c0_i32_0 = arith.constant 0 : i32
    return %arg0, %c0_i32 : i32, i32
  }
}

</mosaic_0001>

<bundles_post_ra>
// kernel: tpu_custom_call.1
= control target key start
LH: loop header
LB: loop body
LE: loop exit
PB: predicated region body
PF: predicated region fallthrough
CT: control target
= control target key end

     0   :  { %6 = vsyncpa [#allocation3], 0  ;;  %s110_s0 = inlined_call_operand.hbm [shape: f32[1,2048], index: 0, kind: input, shape index: {}]   ;;  %s111_s1 = inlined_call_operand.hbm [shape: f32[1,2048], index: 1, kind: output, shape index: {}]  }
   0x1   :  { %7 = vsyncpa [#allocation4], 0  ;;  %s92_s6 = smov [#allocation2]  }
   0x2   :  { %s14_s7 = sshll.u32 %s92_s6, 4  ;;  %s15_s7 = int_to_ptr.vmem [resolvable:$true] %s14_s7 }
   0x3   :  { %s56_s8 = scalar_lea.vmem %s15_s7, 256  ;;  %p61_p1 = scmp.lt.s32.totalorder %s15_s7, %s15_s7 }
   0x4   :  { %p57_p0 = scmp.ne.s32.totalorder %s15_s7, %s56_s8  ;;  %p62_p2 = scmp.lt.s32.totalorder %s56_s8, %s56_s8 }
   0x6   :  { %p63_p3 = por %p62_p2, %p61_p1 }
   0x8   :  { %p64_p4 = pnand %p63_p3, %p57_p0 }
   0xa   :  { %67 = shalt.err (!%p64_p4)
}
   0xb   :  { %17 = dma.hbm_to_vmem [thread:$0]  %s110_s0, 256, %s15_s7, [#allocation3]  }
   0xc   :  { %88 = dma.done.wait [#allocation3], 256  }
   0xd   :  { %89 = vsyncadd [#allocation3], 4294967040  ;;  %v21_v0 = vld [vmem:[#allocation2] sm:$0xff]  ;;  %v22_v1 = vld [vmem:[#allocation2 + $0x8] sm:$0xff]  ;;  %s93_s11 = smov [#allocation5]  }
   0xe   :  { %44 = vtanh.f32 %v21_v0  ;;  %s33_s12 = sshll.u32 %s93_s11, 4  ;;  %s34_s12 = int_to_ptr.vmem [resolvable:$true] %s33_s12 }
   0xf   :  { %46 = vtanh.f32 %v22_v1  ;;  %s68_s13 = scalar_lea.vmem %s34_s12, 256  ;;  %p73_p6 = scmp.lt.s32.totalorder %s34_s12, %s34_s12 }
  0x10   :  { %p69_p5 = scmp.ne.s32.totalorder %s34_s12, %s68_s13  ;;  %p74_p7 = scmp.lt.s32.totalorder %s68_s13, %s68_s13 }
  0x12   :  { %p75_p8 = por %p74_p7, %p73_p6 }
  0x14   :  { %p76_p9 = pnand %p75_p8, %p69_p5 }
  0x1b   :  { %v45_v2 = vpop.eup %44 }
  0x1c   :  { %v47_v3 = vpop.eup %46  ;;  %25 = vst [vmem:[#allocation5] sm:$0xff] %v45_v2 }
  0x1d   :  { %26 = vst [vmem:[#allocation5 + $0x8] sm:$0xff] %v47_v3 }
  0x1e   :  { %79 = shalt.err (!%p76_p9)
}
  0x1f   :  { %36 = dma.vmem_to_hbm [thread:$0]  %s34_s12, 256, %s111_s1, [#allocation4]  }
  0x20   :  { %90 = dma.done.wait [#allocation4], 256  }
  0x21   :  { %91 = vsyncadd [#allocation4], 4294967040 }
  0x22   :  { %40 = vsyncpa [#allocation3], 1 }
  0x23   :  { %41 = vsyncpa [#allocation4], 1 }

</bundles_post_ra>
